<compile_context>
chip_gen: v5e
topology: v5e:2x2
jax: 0.10.0
libtpu: 0.0.40
codegen_flags: <defaults>
</compile_context>

<pallas_src>
import functools

import jax
import jax.numpy as jnp
from jax.experimental import pallas as pl
from jax.experimental.pallas import tpu as pltpu

LANES = 128                     # lane width: last block dim must be a multiple of 128
SUBLANES = 8                    # sublane alignment for the second-to-last block dim
MAX_BLOCK_ROWS = 4096           # (4096, 128) f32 = 2 MiB/block; in+out double-buffered 8 MiB
MIN_PARALLEL_ROWS = 256         # don't shrink blocks below this just to shard across cores
VMEM_LIMIT_BYTES = 32 * 1024 * 1024   # explicit: v5e default scoped VMEM is only 16 MiB


# --------------------------- trace-time recurrence constants ---------------------------
def _recurrence_coeffs(k, poly_type):
    # P_{k+1}(x) = a_k * x * P_k(x) + b_k * P_{k-1}(x),  k >= 1,  P_0 = 1, P_1 = x
    if poly_type == "legendre":
        return (2.0 * k + 1.0) / (k + 1.0), -float(k) / (k + 1.0)
    if poly_type == "chebyshev":
        return 2.0, -1.0
    if poly_type == "hermite":
        return 1.0, -1.0 / float(k)
    raise ValueError(f"No Polynomial type {poly_type} is implemented")


def _scaled_constants(degree, poly_type):
    """Constants for the rescaled basis Q_k = P_k / c_k.

    With c_0 = c_1 = 1 and c_{k+1} = a_k * c_k, the recurrence becomes
        Q_{k+1} = x * Q_k + b'_k * Q_{k-1},   b'_k = b_k * c_{k-1} / c_{k+1},
    i.e. the per-degree a_k*x multiply disappears from Clenshaw; the c_k are folded
    into the weights (scalar SMEM multiplies, once per block).
    """
    c = [1.0, 1.0]
    bp = [0.0]                              # bp[k] valid for k >= 1
    for k in range(1, degree):
        a_k, b_k = _recurrence_coeffs(k, poly_type)
        c.append(a_k * c[k])
        bp.append(b_k * c[k - 1] / c[k + 1])
    return c[: degree + 1], bp


# --------------------------------------- kernel ---------------------------------------
def _poly_kernel(w_ref, x_ref, o_ref, *, degree, poly_type):
    """Clenshaw evaluation of S(x) = sum_k w_k * P_k(x), fused elementwise in VMEM.

    w_ref: (degree+1,)       f32 weights in SMEM (scalar-prefetched)
    x_ref: (block_rows, 128) input tile in VMEM (f32 or bf16; cast in-kernel)
    o_ref: (block_rows, 128) output tile in VMEM
    """
    x = x_ref[...].astype(jnp.float32)                     # in-kernel upcast (bf16 I/O OK)
    c, bp = _scaled_constants(degree, poly_type)
    # Scaled weights w'_k = w_k * c_k: scalar SMEM reads + trace-time-folded scalar muls.
    w = [w_ref[k] if c[k] == 1.0 else w_ref[k] * c[k] for k in range(degree + 1)]

    if degree == 0:
        o_ref[...] = (jnp.zeros_like(x) + w[0]).astype(o_ref.dtype)
        return
    if degree == 1:
        o_ref[...] = (w[0] + w[1] * x).astype(o_ref.dtype)
        return

    # Downward Clenshaw on the rescaled basis (Q_0 = 1, Q_1 = x):
    #   u_k = w'_k + x * u_{k+1} + b'_{k+1} * u_{k+2},   u_{n+1} = u_{n+2} = 0
    #   S   = w'_0 + x * u_1 + b'_1 * u_2
    u2 = w[degree]
    u1 = w[degree - 1] + x * u2
    for k in range(degree - 2, 0, -1):
        u0 = w[k] + x * u1 + bp[k + 1] * u2
        u2 = u1
        u1 = u0
    o_ref[...] = (w[0] + x * u1 + bp[1] * u2).astype(o_ref.dtype)


# --------------------------------------- wrapper --------------------------------------
def _num_tensorcores():
    """Best-effort TensorCore-per-device count (2 on v7x/v4/v5p megacore, 1 on v5e/v6e)."""
    try:
        info = pltpu.get_tpu_info()
        for attr in ("num_cores", "core_count", "tensorcore_count",
                     "num_tensorcores", "cores_per_chip", "num_cores_per_chip"):
            v = getattr(info, attr, None)
            if v:
                return max(1, int(v))
    except Exception:
        pass
    try:
        kind = jax.devices()[0].device_kind.lower()
        if any(t in kind for t in ("v7", "v5p", "v4")):
            return 2
    except Exception:
        pass
    return 1


def _choose_block_rows(r, max_block_rows, num_cores):
    """Biggest block that fits, but >= 2 blocks per TensorCore on multi-TC chips."""
    if num_cores > 1 and r >= 2 * MIN_PARALLEL_ROWS:
        rows = max(pl.cdiv(r, 2 * num_cores), MIN_PARALLEL_ROWS)
        rows = min(rows, max_block_rows)
    else:
        rows = min(r, max_block_rows)           # 1-TC chips: single largest block
    if rows >= r:
        return r                                # whole-array block (always legal)
    return max(SUBLANES, (rows // SUBLANES) * SUBLANES)   # multiple of 8, trailing block may be partial


def _run_blocks(x2d, w_flat, *, degree, poly_type, block_rows, out_dtype):
    r = x2d.shape[0]
    grid = (pl.cdiv(r, block_rows),)
    kern = functools.partial(_poly_kernel, degree=degree, poly_type=poly_type)
    out_shape = jax.ShapeDtypeStruct((r, LANES), out_dtype)
    cparams = pltpu.CompilerParams(
        dimension_semantics=(pltpu.PARALLEL,),
        vmem_limit_bytes=VMEM_LIMIT_BYTES,
    )
    nbytes = r * LANES * (x2d.dtype.itemsize + jnp.dtype(out_dtype).itemsize) + 4 * (degree + 1)
    cost = pl.CostEstimate(flops=int((4 * degree + 2) * r * LANES),
                           transcendentals=0,
                           bytes_accessed=int(nbytes))
    try:
        # Preferred path: weights as a scalar-prefetch operand (single pre-grid SMEM copy).
        call = pl.pallas_call(
            kern,
            out_shape=out_shape,
            grid_spec=pltpu.PrefetchScalarGridSpec(
                num_scalar_prefetch=1,
                grid=grid,
                in_specs=[pl.BlockSpec((block_rows, LANES), lambda i, w: (i, 0))],
                out_specs=pl.BlockSpec((block_rows, LANES), lambda i, w: (i, 0)),
            ),
            compiler_params=cparams,
            cost_estimate=cost,
        )
        return call(w_flat, x2d)
    except Exception:
        # Fallback for jax builds that reject f32 scalar-prefetch operands:
        # whole-array SMEM BlockSpec (constant block index => no per-step re-copy).
        call = pl.pallas_call(
            kern,
            out_shape=out_shape,
            grid_spec=pl.GridSpec(
                grid=grid,
                in_specs=[pl.BlockSpec(memory_space=pltpu.MemorySpace.SMEM),
                          pl.BlockSpec((block_rows, LANES), lambda i: (i, 0))],
                out_specs=pl.BlockSpec((block_rows, LANES), lambda i: (i, 0)),
            ),
            compiler_params=cparams,
            cost_estimate=cost,
        )
        return call(w_flat, x2d)


def univariate_poly(x, weight, *, degree, poly_type, max_block_rows=MAX_BLOCK_ROWS):
    """x: (N,), weight: (1, degree+1) (nn.Linear weight, bias=False) -> (N, 1)."""
    assert x.ndim == 1
    if poly_type not in ("legendre", "chebyshev", "hermite"):
        raise ValueError(f"No Polynomial type {poly_type} is implemented")
    n = x.shape[0]

    # Keep f32 / bf16 inputs as-is (upcast happens in-kernel: no extra HBM pass);
    # anything else is converted once to f32.
    if x.dtype in (jnp.float32, jnp.bfloat16):
        out_dtype = x.dtype
    else:
        x = x.astype(jnp.float32)
        out_dtype = jnp.float32
    w_flat = weight.reshape(-1).astype(jnp.float32)        # (degree+1,) tiny
    assert w_flat.shape[0] == degree + 1

    n_main = (n // LANES) * LANES
    n_tail = n - n_main
    ncores = _num_tensorcores()

    parts = []
    if n_main:
        # Aligned prefix: free reshape on the fully-aligned path (no pad, no slice).
        x_main = x if n_tail == 0 else x[:n_main]
        x2d = x_main.reshape(-1, LANES)
        block_rows = _choose_block_rows(x2d.shape[0], max_block_rows, ncores)
        out2d = _run_blocks(x2d, w_flat, degree=degree, poly_type=poly_type,
                            block_rows=block_rows, out_dtype=out_dtype)
        parts.append(out2d.reshape(n_main))
    if n_tail:
        # <= 127-element tail: pad a single 128-lane row (negligible HBM traffic)
        # instead of padding / re-slicing the whole array.
        tail = jnp.pad(x[n_main:], (0, LANES - n_tail))
        tail_out = _run_blocks(tail.reshape(1, LANES), w_flat, degree=degree,
                               poly_type=poly_type, block_rows=1, out_dtype=out_dtype)
        parts.append(tail_out.reshape(LANES)[:n_tail])
    out = parts[0] if len(parts) == 1 else jnp.concatenate(parts)
    return out.reshape(n, 1)


# ---------------- pure-JAX reference (mirrors the PyTorch module) ----------------
def _vandermonde_ref(x, degree, poly_type):
    cols = [jnp.ones_like(x)]
    if degree > 0:
        cols.append(x)
        for ii in range(1, degree):
            if poly_type == "legendre":
                nxt = ((2 * ii + 1) * x * cols[ii] - ii * cols[ii - 1]) / (ii + 1)
            elif poly_type == "chebyshev":
                nxt = 2 * x * cols[ii] - cols[ii - 1]
            elif poly_type == "hermite":
                nxt = x * cols[ii] - cols[ii - 1] / ii
            else:
                raise ValueError(f"No Polynomial type {poly_type} is implemented")
            cols.append(nxt)
    return jnp.stack(cols, axis=1)  # (N, degree+1)


def univariate_poly_ref(x, weight, *, degree, poly_type):
    vand = _vandermonde_ref(x, degree, poly_type)
    return vand @ weight.T  # (N, 1)


if __name__ == "__main__":
    DEGREE = 5
    N = 256  # small batch of scalar samples (lane-aligned fast path)

    key = jax.random.PRNGKey(0)
    kx, kw, kx2 = jax.random.split(key, 3)
    x = jax.random.uniform(kx, (N,), dtype=jnp.float32, minval=-1.0, maxval=1.0)
    # nn.Linear(degree+1, 1, bias=False).weight has shape (1, degree+1)
    weight = jax.random.normal(kw, (1, DEGREE + 1), dtype=jnp.float32) * 0.1

    ok = True
    for poly_type in ("legendre", "chebyshev", "hermite"):
        out = jax.block_until_ready(
            univariate_poly(x, weight, degree=DEGREE, poly_type=poly_type))
        ref = univariate_poly_ref(x, weight, degree=DEGREE, poly_type=poly_type)
        ok &= out.shape == (N, 1)
        ok &= bool(jnp.allclose(out, ref, atol=3e-5, rtol=3e-5))

    # Ragged (non-lane-aligned) path: aligned prefix + (1,128) tail block.
    N2 = 200
    x2 = jax.random.uniform(kx2, (N2,), dtype=jnp.float32, minval=-1.0, maxval=1.0)
    out2 = jax.block_until_ready(
        univariate_poly(x2, weight, degree=DEGREE, poly_type="legendre"))
    ref2 = univariate_poly_ref(x2, weight, degree=DEGREE, poly_type="legendre")
    ok &= out2.shape == (N2, 1)
    ok &= bool(jnp.allclose(out2, ref2, atol=3e-5, rtol=3e-5))

    # Tail-only path (N < 128).
    x3 = x[:72]
    out3 = jax.block_until_ready(
        univariate_poly(x3, weight, degree=DEGREE, poly_type="hermite"))
    ref3 = univariate_poly_ref(x3, weight, degree=DEGREE, poly_type="hermite")
    ok &= out3.shape == (72, 1)
    ok &= bool(jnp.allclose(out3, ref3, atol=3e-5, rtol=3e-5))

    # bf16 I/O path: loads bf16 tiles, computes in f32 in-kernel, stores bf16.
    xb = x.astype(jnp.bfloat16)
    outb = jax.block_until_ready(
        univariate_poly(xb, weight, degree=DEGREE, poly_type="chebyshev"))
    refb = univariate_poly_ref(xb.astype(jnp.float32), weight,
                               degree=DEGREE, poly_type="chebyshev")
    ok &= outb.dtype == jnp.bfloat16 and outb.shape == (N, 1)
    ok &= bool(jnp.allclose(outb.astype(jnp.float32), refb, atol=5e-2, rtol=5e-2))

    assert ok, "mismatch vs reference"
    print("KERNEL_OK")
</pallas_src>

<mosaic_0001>
module attributes {stable_mosaic.version = 11 : i64} {
  func.func @_poly_kernel(%arg0: i32, %arg1: memref<6xf32, #tpu.memory_space<smem>>, %arg2: memref<2x128xf32, #tpu.memory_space<vmem>>, %arg3: memref<2x128xf32, #tpu.memory_space<vmem>>) attributes {dimension_semantics = [#tpu.dimension_semantics<parallel>], iteration_bounds = array<i64: 1>, scalar_prefetch = 1 : i64, scratch_operands = 0 : i64, tpu.core_type = #tpu.core_type<tc>, window_params = [{transform_indices = @transform_0, window_bounds = array<i64: 2, 128>}, {transform_indices = @transform_1, window_bounds = array<i64: 2, 128>}]} {
    %c0 = arith.constant 0 : index
    %c0_0 = arith.constant 0 : index
    %0 = vector.load %arg2[%c0, %c0_0] : memref<2x128xf32, #tpu.memory_space<vmem>>, vector<2x128xf32>
    %c0_1 = arith.constant 0 : index
    %1 = memref.load %arg1[%c0_1] : memref<6xf32, #tpu.memory_space<smem>>
    %c1 = arith.constant 1 : index
    %2 = memref.load %arg1[%c1] : memref<6xf32, #tpu.memory_space<smem>>
    %c2 = arith.constant 2 : index
    %3 = memref.load %arg1[%c2] : memref<6xf32, #tpu.memory_space<smem>>
    %cst = arith.constant 1.500000e+00 : f32
    %4 = arith.mulf %3, %cst : f32
    %c3 = arith.constant 3 : index
    %5 = memref.load %arg1[%c3] : memref<6xf32, #tpu.memory_space<smem>>
    %cst_2 = arith.constant 2.500000e+00 : f32
    %6 = arith.mulf %5, %cst_2 : f32
    %c4 = arith.constant 4 : index
    %7 = memref.load %arg1[%c4] : memref<6xf32, #tpu.memory_space<smem>>
    %cst_3 = arith.constant 4.375000e+00 : f32
    %8 = arith.mulf %7, %cst_3 : f32
    %c5 = arith.constant 5 : index
    %9 = memref.load %arg1[%c5] : memref<6xf32, #tpu.memory_space<smem>>
    %cst_4 = arith.constant 7.875000e+00 : f32
    %10 = arith.mulf %9, %cst_4 : f32
    %11 = vector.broadcast %10 : f32 to vector<2x128xf32>
    %12 = arith.mulf %0, %11 : vector<2x128xf32>
    %13 = vector.broadcast %8 : f32 to vector<2x128xf32>
    %14 = arith.addf %13, %12 : vector<2x128xf32>
    %15 = arith.mulf %0, %14 : vector<2x128xf32>
    %16 = vector.broadcast %6 : f32 to vector<2x128xf32>
    %17 = arith.addf %16, %15 : vector<2x128xf32>
    %cst_5 = arith.constant -0.253968269 : f32
    %18 = arith.mulf %cst_5, %10 : f32
    %19 = vector.broadcast %18 : f32 to vector<2x128xf32>
    %20 = arith.addf %17, %19 : vector<2x128xf32>
    %21 = arith.mulf %0, %20 : vector<2x128xf32>
    %22 = vector.broadcast %4 : f32 to vector<2x128xf32>
    %23 = arith.addf %22, %21 : vector<2x128xf32>
    %cst_6 = arith.constant -0.257142872 : f32
    %24 = vector.broadcast %cst_6 : f32 to vector<2x128xf32>
    %25 = arith.mulf %24, %14 : vector<2x128xf32>
    %26 = arith.addf %23, %25 : vector<2x128xf32>
    %27 = arith.mulf %0, %26 : vector<2x128xf32>
    %28 = vector.broadcast %2 : f32 to vector<2x128xf32>
    %29 = arith.addf %28, %27 : vector<2x128xf32>
    %cst_7 = arith.constant -0.266666681 : f32
    %30 = vector.broadcast %cst_7 : f32 to vector<2x128xf32>
    %31 = arith.mulf %30, %20 : vector<2x128xf32>
    %32 = arith.addf %29, %31 : vector<2x128xf32>
    %33 = arith.mulf %0, %32 : vector<2x128xf32>
    %34 = vector.broadcast %1 : f32 to vector<2x128xf32>
    %35 = arith.addf %34, %33 : vector<2x128xf32>
    %cst_8 = arith.constant -0.333333343 : f32
    %36 = vector.broadcast %cst_8 : f32 to vector<2x128xf32>
    %37 = arith.mulf %36, %26 : vector<2x128xf32>
    %38 = arith.addf %35, %37 : vector<2x128xf32>
    %c0_9 = arith.constant 0 : index
    %c0_10 = arith.constant 0 : index
    %39 = vector.load %arg3[%c0_9, %c0_10] : memref<2x128xf32, #tpu.memory_space<vmem>>, vector<2x128xf32>
    tpu.vector_store %arg3[%c0_9, %c0_10], %38 {strides = array<i32>} : memref<2x128xf32, #tpu.memory_space<vmem>>, vector<2x128xf32>,
    return
  }
  func.func @transform_0(%arg0: i32, %arg1: memref<6xf32, #tpu.memory_space<smem>>) -> (i32, i32) {
    %c0_i32 = arith.constant 0 : i32
    %c0_i32_0 = arith.constant 0 : i32
    return %arg0, %c0_i32 : i32, i32
  }
  func.func @transform_1(%arg0: i32, %arg1: memref<6xf32, #tpu.memory_space<smem>>) -> (i32, i32) {
    %c0_i32 = arith.constant 0 : i32
    %c0_i32_0 = arith.constant 0 : i32
    return %arg0, %c0_i32 : i32, i32
  }
}

module attributes {stable_mosaic.version = 11 : i64} {
  func.func @_poly_kernel(%arg0: i32, %arg1: memref<6xf32, #tpu.memory_space<smem>>, %arg2: memref<2x128xf32, #tpu.memory_space<vmem>>, %arg3: memref<2x128xf32, #tpu.memory_space<vmem>>) attributes {dimension_semantics = [#tpu.dimension_semantics<parallel>], iteration_bounds = array<i64: 1>, scalar_prefetch = 0 : i64, scratch_operands = 0 : i64, tpu.core_type = #tpu.core_type<tc>, window_params = [{transform_indices = @transform_0, window_bounds = array<i64: 6>}, {transform_indices = @transform_1, window_bounds = array<i64: 2, 128>}, {transform_indices = @transform_2, window_bounds = array<i64: 2, 128>}]} {
    %c0 = arith.constant 0 : index
    %c0_0 = arith.constant 0 : index
    %0 = vector.load %arg2[%c0, %c0_0] : memref<2x128xf32, #tpu.memory_space<vmem>>, vector<2x128xf32>
    %c0_1 = arith.constant 0 : index
    %1 = memref.load %arg1[%c0_1] : memref<6xf32, #tpu.memory_space<smem>>
    %c1 = arith.constant 1 : index
    %2 = memref.load %arg1[%c1] : memref<6xf32, #tpu.memory_space<smem>>
    %c2 = arith.constant 2 : index
    %3 = memref.load %arg1[%c2] : memref<6xf32, #tpu.memory_space<smem>>
    %cst = arith.constant 1.500000e+00 : f32
    %4 = arith.mulf %3, %cst : f32
    %c3 = arith.constant 3 : index
    %5 = memref.load %arg1[%c3] : memref<6xf32, #tpu.memory_space<smem>>
    %cst_2 = arith.constant 2.500000e+00 : f32
    %6 = arith.mulf %5, %cst_2 : f32
    %c4 = arith.constant 4 : index
    %7 = memref.load %arg1[%c4] : memref<6xf32, #tpu.memory_space<smem>>
    %cst_3 = arith.constant 4.375000e+00 : f32
    %8 = arith.mulf %7, %cst_3 : f32
    %c5 = arith.constant 5 : index
    %9 = memref.load %arg1[%c5] : memref<6xf32, #tpu.memory_space<smem>>
    %cst_4 = arith.constant 7.875000e+00 : f32
    %10 = arith.mulf %9, %cst_4 : f32
    %11 = vector.broadcast %10 : f32 to vector<2x128xf32>
    %12 = arith.mulf %0, %11 : vector<2x128xf32>
    %13 = vector.broadcast %8 : f32 to vector<2x128xf32>
    %14 = arith.addf %13, %12 : vector<2x128xf32>
    %15 = arith.mulf %0, %14 : vector<2x128xf32>
    %16 = vector.broadcast %6 : f32 to vector<2x128xf32>
    %17 = arith.addf %16, %15 : vector<2x128xf32>
    %cst_5 = arith.constant -0.253968269 : f32
    %18 = arith.mulf %cst_5, %10 : f32
    %19 = vector.broadcast %18 : f32 to vector<2x128xf32>
    %20 = arith.addf %17, %19 : vector<2x128xf32>
    %21 = arith.mulf %0, %20 : vector<2x128xf32>
    %22 = vector.broadcast %4 : f32 to vector<2x128xf32>
    %23 = arith.addf %22, %21 : vector<2x128xf32>
    %cst_6 = arith.constant -0.257142872 : f32
    %24 = vector.broadcast %cst_6 : f32 to vector<2x128xf32>
    %25 = arith.mulf %24, %14 : vector<2x128xf32>
    %26 = arith.addf %23, %25 : vector<2x128xf32>
    %27 = arith.mulf %0, %26 : vector<2x128xf32>
    %28 = vector.broadcast %2 : f32 to vector<2x128xf32>
    %29 = arith.addf %28, %27 : vector<2x128xf32>
    %cst_7 = arith.constant -0.266666681 : f32
    %30 = vector.broadcast %cst_7 : f32 to vector<2x128xf32>
    %31 = arith.mulf %30, %20 : vector<2x128xf32>
    %32 = arith.addf %29, %31 : vector<2x128xf32>
    %33 = arith.mulf %0, %32 : vector<2x128xf32>
    %34 = vector.broadcast %1 : f32 to vector<2x128xf32>
    %35 = arith.addf %34, %33 : vector<2x128xf32>
    %cst_8 = arith.constant -0.333333343 : f32
    %36 = vector.broadcast %cst_8 : f32 to vector<2x128xf32>
    %37 = arith.mulf %36, %26 : vector<2x128xf32>
    %38 = arith.addf %35, %37 : vector<2x128xf32>
    %c0_9 = arith.constant 0 : index
    %c0_10 = arith.constant 0 : index
    %39 = vector.load %arg3[%c0_9, %c0_10] : memref<2x128xf32, #tpu.memory_space<vmem>>, vector<2x128xf32>
    tpu.vector_store %arg3[%c0_9, %c0_10], %38 {strides = array<i32>} : memref<2x128xf32, #tpu.memory_space<vmem>>, vector<2x128xf32>,
    return
  }
  func.func @transform_0(%arg0: i32) -> i32 {
    %c0_i32 = arith.constant 0 : i32
    %c0_i32_0 = arith.constant 0 : i32
    return %c0_i32 : i32
  }
  func.func @transform_1(%arg0: i32) -> (i32, i32) {
    %c0_i32 = arith.constant 0 : i32
    %c0_i32_0 = arith.constant 0 : i32
    return %arg0, %c0_i32 : i32, i32
  }
  func.func @transform_2(%arg0: i32) -> (i32, i32) {
    %c0_i32 = arith.constant 0 : i32
    %c0_i32_0 = arith.constant 0 : i32
    return %arg0, %c0_i32 : i32, i32
  }
}

</mosaic_0001>

<bundles_post_ra>
// kernel: tpu_custom_call.1
= control target key start
LH: loop header
LB: loop body
LE: loop exit
PB: predicated region body
PF: predicated region fallthrough
CT: control target
= control target key end

     0   :  { %s160_s12 = smov [#allocation3]   ;;  %s187_s0 = inlined_call_operand.hbm [shape: f32[6], index: 0, kind: input, shape index: {}]   ;;  %s188_s1 = inlined_call_operand.hbm [shape: f32[2,128], index: 1, kind: input, shape index: {}]   ;;  %s189_s2 = inlined_call_operand.hbm [shape: f32[2,128], index: 2, kind: output, shape index: {}]  }
   0x1   :  { %s8_s11 = sshll.u32 %s187_s0, 4  ;;  %s9_s11 = int_to_ptr.hbm [resolvable:$true] %s8_s11 }
   0x2   :  { %11 = dma.hbm_to_smem %s9_s11, 16, %s160_s12, [#allocation2] }
   0x3   :  { %154 = dma.done.wait [#allocation2], 16 }
   0x4   :  { %155 = vsyncadd [#allocation2], 4294967280 }
   0x5   :  { %14 = sfence }
   0x6   :  { %15 = vsyncpa [#allocation5], 0 }
   0x7   :  { %16 = vsyncpa [#allocation6], 0  ;;  %s22_s15 = sshll.u32 %s188_s1, 4  ;;  %s161_s16 = smov [#allocation4]   ;;  %s23_s15 = int_to_ptr.hbm [resolvable:$true] %s22_s15 }
   0x8   :  { %s24_s17 = sshll.u32 %s161_s16, 4  ;;  %s25_s17 = int_to_ptr.vmem [resolvable:$true] %s24_s17 }
   0x9   :  { %27 = dma.hbm_to_vmem [thread:$0]  %s23_s15, 32, %s25_s17, [#allocation5]  }
   0xa   :  { %156 = dma.done.wait [#allocation5], 32  }
   0xb   :  { %157 = vsyncadd [#allocation5], 4294967264  ;;  %s88_s0 = sld [smem:[#allocation3 + $0x3]]  ;;  %v32_v0 = vld [vmem:[#allocation4] sm:$0x3]  ;;  %s162_s27 = smov [#allocation7]  }
   0xc   :  { %s89_s18 = sld [smem:[#allocation3 + $0x4]]  ;;  %s74_s28 = sshll.u32 %s162_s27, 4  ;;  %s75_s28 = int_to_ptr.vmem [resolvable:$true] %s74_s28 }
   0xd   :  { %s90_s19 = sld [smem:[#allocation3 + $0x5]]  ;;  %s76_s3 = sshll.u32 %s189_s2, 4  ;;  %s77_s3 = int_to_ptr.hbm [resolvable:$true] %s76_s3 }
   0xe   :  { %s87_s21 = sld [smem:[#allocation3 + $0x2]] }
   0xf   :  { %s86_s25 = sld [smem:[#allocation3 + $0x1]] }
  0x10   :  { %s33_s26 = sld [smem:[#allocation3]] }
  0x11   :  { %s38_s23 = smul.f32 2.5, %s88_s0 }
  0x12   :  { %s40_s20 = smul.f32 4.375, %s89_s18 }
  0x13   :  { %s42_s22 = smul.f32 7.875, %s90_s19  ;;  %v48_v5 = vstv %s38_s23 }
  0x14   :  { %v45_v2 = vstv %s40_s20  ;;  %s36_s1 = smul.f32 1.5, %s87_s21 }
  0x15   :  { %v43_v1 = vstv %s42_s22  ;;  %s50_s24 = smul.f32 -0.25396827, %s42_s22  ;;  %v59_v15 = vstv %s86_s25 }
  0x16   :  { %v44_v3 = vmul.f32 %v43_v1, %v32_v0  ;;  %v54_v10 = vstv %s36_s1  ;;  %v64_v20 = vstv %s33_s26 }
  0x17   :  { %v51_v7 = vstv %s50_s24 }
  0x18   :  { %v46_v4 = vadd.f32 %v45_v2, %v44_v3 }
  0x1a   :  { %v47_v6 = vmul.f32 %v46_v4, %v32_v0  ;;  %v56_v12 = vmul.f32 -0.25714287, %v46_v4 }
  0x1c   :  { %v49_v8 = vadd.f32 %v48_v5, %v47_v6 }
  0x1e   :  { %v52_v9 = vadd.f32 %v51_v7, %v49_v8 }
  0x20   :  { %v53_v11 = vmul.f32 %v52_v9, %v32_v0  ;;  %v61_v17 = vmul.f32 -0.26666668, %v52_v9 }
  0x22   :  { %v55_v13 = vadd.f32 %v54_v10, %v53_v11 }
  0x24   :  { %v57_v14 = vadd.f32 %v56_v12, %v55_v13 }
  0x26   :  { %v58_v16 = vmul.f32 %v57_v14, %v32_v0  ;;  %v66_v22 = vmul.f32 -0.33333334, %v57_v14 }
  0x28   :  { %v60_v18 = vadd.f32 %v59_v15, %v58_v16 }
  0x2a   :  { %v62_v19 = vadd.f32 %v61_v17, %v60_v18 }
  0x2c   :  { %v63_v21 = vmul.f32 %v62_v19, %v32_v0 }
  0x2e   :  { %v65_v23 = vadd.f32 %v64_v20, %v63_v21 }
  0x30   :  { %v67_v24 = vadd.f32 %v66_v22, %v65_v23 }
  0x32   :  { %68 = vst [vmem:[#allocation7] sm:$0x3] %v67_v24 }
  0x33   :  { %79 = dma.vmem_to_hbm [thread:$0]  %s75_s28, 32, %s77_s3, [#allocation6]  }
  0x34   :  { %158 = dma.done.wait [#allocation6], 32  }
  0x35   :  { %159 = vsyncadd [#allocation6], 4294967264 }
  0x36   :  { %84 = vsyncpa [#allocation5], 1 }
  0x37   :  { %85 = vsyncpa [#allocation6], 1 }

// kernel: tpu_custom_call.1
= control target key start
LH: loop header
LB: loop body
LE: loop exit
PB: predicated region body
PF: predicated region fallthrough
CT: control target
= control target key end

     0   :  { %7 = vsyncpa [#allocation5], 0  ;;  %s195_s0 = inlined_call_operand.hbm [shape: f32[6], index: 0, kind: input, shape index: {}]   ;;  %s196_s1 = inlined_call_operand.hbm [shape: f32[2,128], index: 1, kind: input, shape index: {}]   ;;  %s197_s2 = inlined_call_operand.hbm [shape: f32[2,128], index: 2, kind: output, shape index: {}]  }
   0x1   :  { %8 = vsyncpa [#allocation3], 0 }
   0x2   :  { %9 = vsyncpa [#allocation4], 0  ;;  %s15_s11 = sshll.u32 %s195_s0, 4  ;;  %s24_s14 = sshll.u32 %s196_s1, 4  ;;  %s16_s11 = int_to_ptr.hbm [resolvable:$true] %s15_s11  ;;  %s25_s14 = int_to_ptr.hbm [resolvable:$true] %s24_s14 }
   0x3   :  { %s168_s15 = smov [#allocation2]   ;;  %s169_s16 = smov [#allocation6]  }
   0x4   :  { %18 = dma.hbm_to_smem %s16_s11, 16, %s168_s15, [#allocation5]  }
   0x5   :  { %s26_s17 = sshll.u32 %s169_s16, 4  ;;  %s27_s17 = int_to_ptr.vmem [resolvable:$true] %s26_s17 }
   0x6   :  { %29 = dma.hbm_to_vmem [thread:$0]  %s25_s14, 32, %s27_s17, [#allocation3]  }
   0x7   :  { %162 = dma.done.wait [#allocation5], 16  }
   0x8   :  { %163 = vsyncadd [#allocation5], 4294967280 }
   0x9   :  { %164 = dma.done.wait [#allocation3], 32  }
   0xa   :  { %165 = vsyncadd [#allocation3], 4294967264 }
   0xb   :  { %38 = sfence }
   0xc   :  { %s96_s18 = sld [smem:[#allocation2 + $0x3]]  ;;  %v39_v0 = vld [vmem:[#allocation6] sm:$0x3]  ;;  %s170_s27 = smov [#allocation7]  }
   0xd   :  { %s97_s19 = sld [smem:[#allocation2 + $0x4]]  ;;  %s81_s28 = sshll.u32 %s170_s27, 4  ;;  %s82_s28 = int_to_ptr.vmem [resolvable:$true] %s81_s28 }
   0xe   :  { %s98_s0 = sld [smem:[#allocation2 + $0x5]]  ;;  %s83_s3 = sshll.u32 %s197_s2, 4  ;;  %s84_s3 = int_to_ptr.hbm [resolvable:$true] %s83_s3 }
   0xf   :  { %s95_s21 = sld [smem:[#allocation2 + $0x2]] }
  0x10   :  { %s94_s25 = sld [smem:[#allocation2 + $0x1]] }
  0x11   :  { %s40_s26 = sld [smem:[#allocation2]] }
  0x12   :  { %s45_s1 = smul.f32 2.5, %s96_s18 }
  0x13   :  { %s47_s20 = smul.f32 4.375, %s97_s19 }
  0x14   :  { %s49_s22 = smul.f32 7.875, %s98_s0  ;;  %v55_v5 = vstv %s45_s1 }
  0x15   :  { %v52_v2 = vstv %s47_s20  ;;  %s43_s24 = smul.f32 1.5, %s95_s21 }
  0x16   :  { %v50_v1 = vstv %s49_s22  ;;  %s57_s23 = smul.f32 -0.25396827, %s49_s22  ;;  %v66_v15 = vstv %s94_s25 }
  0x17   :  { %v51_v3 = vmul.f32 %v50_v1, %v39_v0  ;;  %v61_v10 = vstv %s43_s24  ;;  %v71_v20 = vstv %s40_s26 }
  0x18   :  { %v58_v7 = vstv %s57_s23 }
  0x19   :  { %v53_v4 = vadd.f32 %v52_v2, %v51_v3 }
  0x1b   :  { %v54_v6 = vmul.f32 %v53_v4, %v39_v0  ;;  %v63_v12 = vmul.f32 -0.25714287, %v53_v4 }
  0x1d   :  { %v56_v8 = vadd.f32 %v55_v5, %v54_v6 }
  0x1f   :  { %v59_v9 = vadd.f32 %v58_v7, %v56_v8 }
  0x21   :  { %v60_v11 = vmul.f32 %v59_v9, %v39_v0  ;;  %v68_v17 = vmul.f32 -0.26666668, %v59_v9 }
  0x23   :  { %v62_v13 = vadd.f32 %v61_v10, %v60_v11 }
  0x25   :  { %v64_v14 = vadd.f32 %v63_v12, %v62_v13 }
  0x27   :  { %v65_v16 = vmul.f32 %v64_v14, %v39_v0  ;;  %v73_v22 = vmul.f32 -0.33333334, %v64_v14 }
  0x29   :  { %v67_v18 = vadd.f32 %v66_v15, %v65_v16 }
  0x2b   :  { %v69_v19 = vadd.f32 %v68_v17, %v67_v18 }
  0x2d   :  { %v70_v21 = vmul.f32 %v69_v19, %v39_v0 }
  0x2f   :  { %v72_v23 = vadd.f32 %v71_v20, %v70_v21 }
  0x31   :  { %v74_v24 = vadd.f32 %v73_v22, %v72_v23 }
  0x33   :  { %75 = vst [vmem:[#allocation7] sm:$0x3] %v74_v24 }
  0x34   :  { %86 = dma.vmem_to_hbm [thread:$0]  %s82_s28, 32, %s84_s3, [#allocation4]  }
  0x35   :  { %166 = dma.done.wait [#allocation4], 32  }
  0x36   :  { %167 = vsyncadd [#allocation4], 4294967264 }
  0x37   :  { %91 = vsyncpa [#allocation3], 1 }
  0x38   :  { %92 = vsyncpa [#allocation4], 1 }
  0x39   :  { %93 = vsyncpa [#allocation5], 1 }

</bundles_post_ra>
